<compile_context>
chip_gen: v7x
topology: tpu7x:2x2x1
jax: 0.10.0
libtpu: 0.0.40
codegen_flags: <defaults>
</compile_context>

<pallas_src>
import functools

import jax
import jax.numpy as jnp
from jax.experimental import pallas as pl
from jax.experimental.pallas import tpu as pltpu

LEAKY_SLOPE = 0.01  # PyTorch nn.LeakyReLU default negative_slope


def _bf16_vpu_available() -> bool:
    """bf16 elementwise path only on chips with bf16 VALUs (v6e/v7x); f32 on v2-v5."""
    try:
        kind = jax.devices()[0].device_kind.lower()
    except Exception:
        return True
    return not any(t in kind for t in ("v2", "v3", "v4", "v5"))


def _make_critic_kernel(num_hidden: int, bf16_acts: bool):
    """Fused MLP kernel for one (TILE_B, num_input) batch tile."""
    act_dtype = jnp.bfloat16 if bf16_acts else jnp.float32

    def bias_lrelu(h_f32, b):
        # bf16 path: cast the f32 MXU accumulator once, do bias + LeakyReLU in bf16.
        # f32 path (v5e): the casts below are no-ops and everything stays f32.
        h = h_f32.astype(act_dtype) + b.astype(act_dtype)
        return jnp.maximum(h, LEAKY_SLOPE * h)      # one VALU op per element

    def kernel(*refs):
        # refs = (x, w_in, b_in, [w_h, b_h]*num_hidden, w_out_col, b_out, out)
        x_ref = refs[0]
        o_ref = refs[-1]
        p = refs[1:-1]

        # ---- input layer: cast x in VMEM, MXU matmul with f32 accumulation ----
        xb = x_ref[...].astype(jnp.bfloat16)
        h = bias_lrelu(
            jnp.dot(xb, p[0][...], preferred_element_type=jnp.float32), p[1][...])

        # ---- hidden layers (python-unrolled; each resident weight read once) ----
        idx = 2
        for _ in range(num_hidden):
            w = p[idx][...]                          # (H, H), bf16
            b = p[idx + 1][...]                      # (1, H), f32
            h = bias_lrelu(
                jnp.dot(h.astype(jnp.bfloat16), w,
                        preferred_element_type=jnp.float32), b)
            idx += 2

        # ---- output layer (H -> 1): XLU transpose + cross-sublane reduce gives a
        #      lane-dense (1, TILE_B) row -> unmasked vst on the output ----
        w_out = p[idx][...]                          # (H, 1), f32
        b_out = p[idx + 1][...]                      # (1, 1), f32
        hf = h.astype(jnp.float32)
        out_row = jnp.sum(hf.T * w_out, axis=0, keepdims=True) + b_out   # (1, TILE_B)
        o_ref[...] = jnp.tanh(out_row)

    return kernel


def prepare_critic_params(params):
    """One-time cast OUTSIDE the jitted forward: matmul weights -> bf16 (MXU inputs),
    biases and the (H, 1) output column -> f32.  Call once, reuse every step."""
    n = len(params)
    assert n >= 4 and n % 2 == 0
    kp = []
    for i in range(0, n - 2, 2):
        kp.append(jnp.asarray(params[i], jnp.bfloat16))      # weight
        kp.append(jnp.asarray(params[i + 1], jnp.float32))   # bias
    kp.append(jnp.asarray(params[-2], jnp.float32))          # (H, 1) output weight column
    kp.append(jnp.asarray(params[-1], jnp.float32))          # (1, 1) output bias
    return tuple(kp)


@functools.partial(jax.jit, static_argnames=("tile_b", "bf16_acts"))
def _critic_forward_jit(x, kparams, *, tile_b: int, bf16_acts: bool):
    # PyTorch: if len(X.shape) < 2: X = X.unsqueeze(0)
    if x.ndim < 2:
        x = x[None, :]
    batch, num_input = x.shape
    hidden = kparams[0].shape[1]
    num_hidden = (len(kparams) - 4) // 2

    tile_b = max(128, (int(tile_b) // 128) * 128)   # keep the tile lane-aligned

    if batch >= 256:
        # Multi-tile path: 128-multiple tile, capped so both v7x TensorCores get >= 1 tile.
        # No padding copy of x: Pallas masks the ragged last block (compute is
        # row-independent; out-of-bounds output columns are dropped).
        eff_tile = max(128, min(tile_b, 128 * pl.cdiv(pl.cdiv(batch, 2), 128)))
        rows = batch
    else:
        # Tiny single-tile path: round up to a sublane multiple (<= 7 pad rows, negligible).
        eff_tile = 8 * pl.cdiv(batch, 8)
        if eff_tile != batch:
            x = jnp.pad(x, ((0, eff_tile - batch), (0, 0)))
        rows = eff_tile
    n_tiles = pl.cdiv(rows, eff_tile)

    flops = 2 * rows * (num_input * hidden + num_hidden * hidden * hidden + hidden)
    bytes_accessed = (int(x.size) * x.dtype.itemsize
                      + sum(int(p.size) * p.dtype.itemsize for p in kparams)
                      + rows * 4)
    cost = pl.CostEstimate(flops=int(flops), transcendentals=int(rows),
                           bytes_accessed=int(bytes_accessed))

    in_specs = [pl.BlockSpec((eff_tile, num_input), lambda i: (i, 0))]
    # Weights/biases: full blocks, constant index_map -> VMEM resident, no per-step re-DMA.
    in_specs += [pl.BlockSpec(p.shape, lambda i: (0, 0)) for p in kparams]
    out_spec = pl.BlockSpec((1, eff_tile), lambda i: (0, i))   # lane-dense output row

    out_row = pl.pallas_call(
        _make_critic_kernel(num_hidden, bf16_acts),
        out_shape=jax.ShapeDtypeStruct((1, rows), jnp.float32),
        grid=(n_tiles,),
        in_specs=in_specs,
        out_specs=out_spec,
        compiler_params=pltpu.CompilerParams(
            dimension_semantics=("parallel",)),
        cost_estimate=cost,
    )(x, *kparams)

    # Back to the module's (batch, 1) output layout.
    return out_row[0, :batch].reshape(batch, 1)


def critic_forward(x, kparams, *, tile_b: int = 512, bf16_acts=None):
    """kparams: output of prepare_critic_params. tile_b: batch tile (sweep 512-2048)."""
    if bf16_acts is None:
        bf16_acts = _bf16_vpu_available()
    return _critic_forward_jit(x, kparams, tile_b=int(tile_b), bf16_acts=bool(bf16_acts))


def init_critic_params(key, num_input, num_hidden, hidden_size):
    """Deterministic synthetic parameter init (not a checkpoint load)."""
    keys = jax.random.split(key, 2 * (num_hidden + 2))
    params = []
    params.append(jax.random.normal(keys[0], (num_input, hidden_size), jnp.float32)
                  * (1.0 / jnp.sqrt(num_input)))
    params.append(jax.random.normal(keys[1], (1, hidden_size), jnp.float32) * 0.01)
    for i in range(num_hidden):
        kw, kb = keys[2 + 2 * i], keys[3 + 2 * i]
        params.append(jax.random.normal(kw, (hidden_size, hidden_size), jnp.float32)
                      * (1.0 / jnp.sqrt(hidden_size)))
        params.append(jax.random.normal(kb, (1, hidden_size), jnp.float32) * 0.01)
    kw, kb = keys[-2], keys[-1]
    params.append(jax.random.normal(kw, (hidden_size, 1), jnp.float32)
                  * (1.0 / jnp.sqrt(hidden_size)))
    params.append(jax.random.normal(kb, (1, 1), jnp.float32) * 0.01)
    return tuple(params)


def critic_reference_f32(x, params, num_hidden):
    """Pure-f32 JAX reference (semantics of the PyTorch module)."""
    if x.ndim < 2:
        x = x[None, :]
    h = x @ params[0] + params[1]
    h = jnp.where(h > 0, h, LEAKY_SLOPE * h)
    idx = 2
    for _ in range(num_hidden):
        h = h @ params[idx] + params[idx + 1]
        h = jnp.where(h > 0, h, LEAKY_SLOPE * h)
        idx += 2
    return jnp.tanh(h @ params[idx] + params[idx + 1])


def critic_reference_matched(x, params, num_hidden, bf16_acts):
    """Reference using the same bf16-weight / f32-accumulate / activation-dtype recipe."""
    if x.ndim < 2:
        x = x[None, :]
    act = jnp.bfloat16 if bf16_acts else jnp.float32

    def layer(h, w, b):
        acc = jnp.dot(h.astype(jnp.bfloat16), w.astype(jnp.bfloat16),
                      preferred_element_type=jnp.float32)
        a = acc.astype(act) + b.astype(act)
        return jnp.maximum(a, LEAKY_SLOPE * a)

    h = layer(x, params[0], params[1])
    idx = 2
    for _ in range(num_hidden):
        h = layer(h, params[idx], params[idx + 1])
        idx += 2
    pre = jnp.dot(h.astype(jnp.float32), params[idx]) + params[idx + 1]
    return jnp.tanh(pre)


if __name__ == "__main__":
    NUM_INPUT = 16
    NUM_HIDDEN = 1
    HIDDEN_SIZE = 128
    BATCH = 8

    key = jax.random.PRNGKey(0)
    k_x, k_p, k_x2, k_x3 = jax.random.split(key, 4)
    raw_params = init_critic_params(k_p, NUM_INPUT, NUM_HIDDEN, HIDDEN_SIZE)
    kparams = prepare_critic_params(raw_params)        # one-time cast, outside the jit
    bf16_acts = _bf16_vpu_available()

    # Small batch (single sublane-aligned tile).
    x = jax.random.normal(k_x, (BATCH, NUM_INPUT), jnp.float32)
    out = jax.block_until_ready(critic_forward(x, kparams, bf16_acts=bf16_acts))
    assert out.shape == (BATCH, 1), out.shape
    ref_m = critic_reference_matched(x, raw_params, NUM_HIDDEN, bf16_acts)
    ref_f = critic_reference_f32(x, raw_params, NUM_HIDDEN)
    assert jnp.allclose(out, ref_m, atol=5e-3, rtol=5e-3), float(jnp.max(jnp.abs(out - ref_m)))
    assert jnp.allclose(out, ref_f, atol=5e-2, rtol=5e-2), float(jnp.max(jnp.abs(out - ref_f)))

    # Multi-tile ragged batch (2 tiles for megacore; partial last block, no wrapper pad).
    BATCH2 = 272
    x2 = jax.random.normal(k_x2, (BATCH2, NUM_INPUT), jnp.float32)
    out2 = jax.block_until_ready(critic_forward(x2, kparams, bf16_acts=bf16_acts))
    assert out2.shape == (BATCH2, 1), out2.shape
    ref2 = critic_reference_matched(x2, raw_params, NUM_HIDDEN, bf16_acts)
    assert jnp.allclose(out2, ref2, atol=5e-3, rtol=5e-3), float(jnp.max(jnp.abs(out2 - ref2)))

    # Larger batch exercising the default 512-row tile with a ragged tail (3 tiles).
    BATCH3 = 1041
    x3 = jax.random.normal(k_x3, (BATCH3, NUM_INPUT), jnp.float32)
    out3 = jax.block_until_ready(critic_forward(x3, kparams, bf16_acts=bf16_acts))
    assert out3.shape == (BATCH3, 1), out3.shape
    ref3 = critic_reference_matched(x3, raw_params, NUM_HIDDEN, bf16_acts)
    assert jnp.allclose(out3, ref3, atol=5e-3, rtol=5e-3), float(jnp.max(jnp.abs(out3 - ref3)))

    # 1-D input path (PyTorch unsqueeze behaviour).
    x1 = jax.random.normal(k_x, (NUM_INPUT,), jnp.float32)
    out1 = jax.block_until_ready(critic_forward(x1, kparams, bf16_acts=bf16_acts))
    assert out1.shape == (1, 1), out1.shape

    print("KERNEL_OK")
</pallas_src>

<mosaic_0001>
module attributes {stable_mosaic.version = 11 : i64} {
  func.func @kernel(%arg0: i32, %arg1: memref<8x16xf32, #tpu.memory_space<vmem>>, %arg2: memref<16x128xbf16, #tpu.memory_space<vmem>>, %arg3: memref<1x128xf32, #tpu.memory_space<vmem>>, %arg4: memref<128x128xbf16, #tpu.memory_space<vmem>>, %arg5: memref<1x128xf32, #tpu.memory_space<vmem>>, %arg6: memref<128x1xf32, #tpu.memory_space<vmem>>, %arg7: memref<1x1xf32, #tpu.memory_space<vmem>>, %arg8: memref<1x8xf32, #tpu.memory_space<vmem>>) attributes {dimension_semantics = [#tpu.dimension_semantics<parallel>], iteration_bounds = array<i64: 1>, scalar_prefetch = 0 : i64, scratch_operands = 0 : i64, tpu.core_type = #tpu.core_type<tc>, window_params = [{transform_indices = @transform_0, window_bounds = array<i64: 8, 16>}, {pipeline_mode = #tpu.pipeline_mode<synchronous>, transform_indices = @transform_1, window_bounds = array<i64: 16, 128>}, {pipeline_mode = #tpu.pipeline_mode<synchronous>, transform_indices = @transform_2, window_bounds = array<i64: 1, 128>}, {pipeline_mode = #tpu.pipeline_mode<synchronous>, transform_indices = @transform_3, window_bounds = array<i64: 128, 128>}, {pipeline_mode = #tpu.pipeline_mode<synchronous>, transform_indices = @transform_4, window_bounds = array<i64: 1, 128>}, {pipeline_mode = #tpu.pipeline_mode<synchronous>, transform_indices = @transform_5, window_bounds = array<i64: 128, 1>}, {pipeline_mode = #tpu.pipeline_mode<synchronous>, transform_indices = @transform_6, window_bounds = array<i64: 1, 1>}, {transform_indices = @transform_7, window_bounds = array<i64: 1, 8>}]} {
    %c0 = arith.constant 0 : index
    %c0_0 = arith.constant 0 : index
    %0 = vector.load %arg1[%c0, %c0_0] : memref<8x16xf32, #tpu.memory_space<vmem>>, vector<8x16xf32>
    %1 = arith.truncf %0 : vector<8x16xf32> to vector<8x16xbf16>
    %c0_1 = arith.constant 0 : index
    %c0_2 = arith.constant 0 : index
    %2 = vector.load %arg2[%c0_1, %c0_2] : memref<16x128xbf16, #tpu.memory_space<vmem>>, vector<16x128xbf16>
    %cst = arith.constant dense<0.000000e+00> : vector<8x128xf32>
    %3 = tpu.matmul %1, %2, %cst {dimension_numbers = #tpu.dot_dimension_numbers<[1], [0], [0], [1], [0, 0, 1, 1], [], []>} : vector<8x16xbf16>, vector<16x128xbf16>, vector<8x128xf32> -> vector<8x128xf32>
    %c0_3 = arith.constant 0 : index
    %c0_4 = arith.constant 0 : index
    %4 = vector.load %arg3[%c0_3, %c0_4] : memref<1x128xf32, #tpu.memory_space<vmem>>, vector<1x128xf32>
    %5 = arith.truncf %3 : vector<8x128xf32> to vector<8x128xbf16>
    %6 = arith.truncf %4 : vector<1x128xf32> to vector<1x128xbf16>
    %7 = vector.broadcast %6 : vector<1x128xbf16> to vector<8x128xbf16>
    %8 = arith.addf %5, %7 : vector<8x128xbf16>
    %cst_5 = arith.constant 1.000980e-02 : bf16
    %9 = vector.broadcast %cst_5 : bf16 to vector<8x128xbf16>
    %10 = arith.mulf %9, %8 : vector<8x128xbf16>
    %11 = arith.maximumf %8, %10 : vector<8x128xbf16>
    %c0_6 = arith.constant 0 : index
    %c0_7 = arith.constant 0 : index
    %12 = vector.load %arg4[%c0_6, %c0_7] : memref<128x128xbf16, #tpu.memory_space<vmem>>, vector<128x128xbf16>
    %c0_8 = arith.constant 0 : index
    %c0_9 = arith.constant 0 : index
    %13 = vector.load %arg5[%c0_8, %c0_9] : memref<1x128xf32, #tpu.memory_space<vmem>>, vector<1x128xf32>
    %cst_10 = arith.constant dense<0.000000e+00> : vector<8x128xf32>
    %14 = tpu.matmul %11, %12, %cst_10 {dimension_numbers = #tpu.dot_dimension_numbers<[1], [0], [0], [1], [0, 0, 1, 1], [], []>} : vector<8x128xbf16>, vector<128x128xbf16>, vector<8x128xf32> -> vector<8x128xf32>
    %15 = arith.truncf %14 : vector<8x128xf32> to vector<8x128xbf16>
    %16 = arith.truncf %13 : vector<1x128xf32> to vector<1x128xbf16>
    %17 = vector.broadcast %16 : vector<1x128xbf16> to vector<8x128xbf16>
    %18 = arith.addf %15, %17 : vector<8x128xbf16>
    %cst_11 = arith.constant 1.000980e-02 : bf16
    %19 = vector.broadcast %cst_11 : bf16 to vector<8x128xbf16>
    %20 = arith.mulf %19, %18 : vector<8x128xbf16>
    %21 = arith.maximumf %18, %20 : vector<8x128xbf16>
    %c0_12 = arith.constant 0 : index
    %c0_13 = arith.constant 0 : index
    %22 = vector.load %arg6[%c0_12, %c0_13] : memref<128x1xf32, #tpu.memory_space<vmem>>, vector<128x1xf32>
    %c0_14 = arith.constant 0 : index
    %c0_15 = arith.constant 0 : index
    %23 = vector.load %arg7[%c0_14, %c0_15] : memref<1x1xf32, #tpu.memory_space<vmem>>, vector<1x1xf32>
    %24 = arith.extf %21 : vector<8x128xbf16> to vector<8x128xf32>
    %25 = tpu.transpose %24, [1, 0] : vector<8x128xf32> -> vector<128x8xf32>
    %26 = vector.broadcast %22 : vector<128x1xf32> to vector<128x8xf32>
    %27 = arith.mulf %25, %26 : vector<128x8xf32>
    %cst_16 = arith.constant dense<0.000000e+00> : vector<8xf32>
    %28 = vector.multi_reduction <add>, %27, %cst_16 [0] : vector<128x8xf32> to vector<8xf32>
    %29 = vector.shape_cast %28 : vector<8xf32> to vector<1x8xf32>
    %30 = vector.broadcast %23 : vector<1x1xf32> to vector<1x8xf32>
    %31 = arith.addf %29, %30 : vector<1x8xf32>
    %32 = math.tanh %31 : vector<1x8xf32>
    %c0_17 = arith.constant 0 : index
    %c0_18 = arith.constant 0 : index
    %33 = vector.load %arg8[%c0_17, %c0_18] : memref<1x8xf32, #tpu.memory_space<vmem>>, vector<1x8xf32>
    tpu.vector_store %arg8[%c0_17, %c0_18], %32 {strides = array<i32>} : memref<1x8xf32, #tpu.memory_space<vmem>>, vector<1x8xf32>,
    return
  }
  func.func @transform_0(%arg0: i32) -> (i32, i32) {
    %c0_i32 = arith.constant 0 : i32
    %c0_i32_0 = arith.constant 0 : i32
    return %arg0, %c0_i32 : i32, i32
  }
  func.func @transform_1(%arg0: i32) -> (i32, i32) {
    %c0_i32 = arith.constant 0 : i32
    %c0_i32_0 = arith.constant 0 : i32
    %c0_i32_1 = arith.constant 0 : i32
    return %c0_i32, %c0_i32_0 : i32, i32
  }
  func.func @transform_2(%arg0: i32) -> (i32, i32) {
    %c0_i32 = arith.constant 0 : i32
    %c0_i32_0 = arith.constant 0 : i32
    %c0_i32_1 = arith.constant 0 : i32
    return %c0_i32, %c0_i32_0 : i32, i32
  }
  func.func @transform_3(%arg0: i32) -> (i32, i32) {
    %c0_i32 = arith.constant 0 : i32
    %c0_i32_0 = arith.constant 0 : i32
    %c0_i32_1 = arith.constant 0 : i32
    return %c0_i32, %c0_i32_0 : i32, i32
  }
  func.func @transform_4(%arg0: i32) -> (i32, i32) {
    %c0_i32 = arith.constant 0 : i32
    %c0_i32_0 = arith.constant 0 : i32
    %c0_i32_1 = arith.constant 0 : i32
    return %c0_i32, %c0_i32_0 : i32, i32
  }
  func.func @transform_5(%arg0: i32) -> (i32, i32) {
    %c0_i32 = arith.constant 0 : i32
    %c0_i32_0 = arith.constant 0 : i32
    %c0_i32_1 = arith.constant 0 : i32
    return %c0_i32, %c0_i32_0 : i32, i32
  }
  func.func @transform_6(%arg0: i32) -> (i32, i32) {
    %c0_i32 = arith.constant 0 : i32
    %c0_i32_0 = arith.constant 0 : i32
    %c0_i32_1 = arith.constant 0 : i32
    return %c0_i32, %c0_i32_0 : i32, i32
  }
  func.func @transform_7(%arg0: i32) -> (i32, i32) {
    %c0_i32 = arith.constant 0 : i32
    %c0_i32_0 = arith.constant 0 : i32
    return %c0_i32, %arg0 : i32, i32
  }
}

</mosaic_0001>

<bundles_post_ra>
// kernel: _critic_forward_jit.1
= control target key start
LH: loop header
LB: loop body
LE: loop exit
PB: predicated region body
PF: predicated region fallthrough
CT: control target
= control target key end

     0   :  { %s678_s0 = inlined_call_operand.vmem [shape: f32[8,16], index: 0, kind: input, shape index: {}]   ;;  %s679_s1 = inlined_call_operand.vmem [shape: bf16[16,128], index: 1, kind: input, shape index: {}]   ;;  %s680_s2 = inlined_call_operand.vmem [shape: f32[1,128], index: 2, kind: input, shape index: {}]   ;;  %s681_s3 = inlined_call_operand.vmem [shape: bf16[128,128], index: 3, kind: input, shape index: {}]   ;;  %s682_s4 = inlined_call_operand.vmem [shape: f32[1,128], index: 4, kind: input, shape index: {}]   ;;  %s683_s5 = inlined_call_operand.vmem [shape: f32[128,1], index: 5, kind: input, shape index: {}]   ;;  %s684_s6 = inlined_call_operand.<no memory space> [shape: f32[1,1], index: 6, kind: input, shape index: {}]   ;;  %s685_s7 = inlined_call_operand.hbm [shape: f32[1,8], index: 7, kind: output, shape index: {}]  }
   0x1   :  { %v12_v0 = vstv %s684_s6 }
   0x2   :  { %13 = vst [vmem:[#allocation2] sm:$0x1] %v12_v0 }
   0x3   :  { %v479_v1 = vld [vmem:[%s679_s1] sm:$0xff]   ;;  %v514_v2 = vmov 0.0   ;;  %vm41_vm0 = vcmask 130048   ;;  %vm515_vm1 = vmmov 0   ;;  %v481_v6 = vld [vmem:[%s681_s3 + $0x8] sm:$0xff]   ;;  %v482_v7 = vld [vmem:[%s681_s3 + $0x10] sm:$0xff]  }
   0x4   :  { %447 = vmatprep.subr.bf16.mxu0 %v514_v2  ;;  %v31_v3 = vld [vmem:[%s678_s0] sm:$0xff]  ;;  %453 = vmatprep.subr.bf16.mxu1 %v514_v2 }
   0x5   :  { %v480_v4 = vld [vmem:[%s681_s3] sm:$0xff]   ;;  %448 = vmatpush3.bf16.msra.mxu0 %v479_v1  ;;  %449 = vmatprep.mubr.msk.bf16.mxu0 %vm515_vm1, %v514_v2  ;;  %v32_v5 = vpack.c.bf16 %v31_v3, %v31_v3 }
   0x6   :  { %454 = vmatpush3.bf16.msra.mxu1 %v480_v4  ;;  %469 = vmatprep.mubr.msk.bf16.mxu1 %vm515_vm1, %v514_v2 }
   0x7   :  { %455 = vmatprep.subr.bf16.mxu1 %v514_v2 }
   0x8   :  { %450 = vmatmul.mubr.msk.bf16.vlgmr.msra.gmra.mrb[0].mxu0 %vm41_vm0, %v32_v5 }
   0xa   :  { %456 = vmatpush3.bf16.msra.mxu1 %v481_v6 }
   0xb   :  { %457 = vmatprep.subr.bf16.mxu1 %v514_v2 }
   0xc   :  { %14 = vsyncpa [#allocation4], 0  ;;  %v483_v8 = vld [vmem:[%s681_s3 + $0x18] sm:$0xff]   ;;  %v484_v9 = vld [vmem:[%s681_s3 + $0x20] sm:$0xff]   ;;  %v516_v14 = vmov 0   ;;  %v91_v21 = vlaneseq  ;;  %vm361_vm2 = vcmask 64512  }
   0xd   :  { %v485_v10 = vld [vmem:[%s681_s3 + $0x28] sm:$0xff]   ;;  %v486_v11 = vld [vmem:[%s681_s3 + $0x30] sm:$0xff]   ;;  %v487_v12 = vld [vmem:[%s681_s3 + $0x38] sm:$0xff]   ;;  %478 = vset.pattern.permute.xlu1 %v516_v14  ;;  %477 = vset.pattern.permute.xlu0 %v516_v14  ;;  %vm410_vm3 = vcmask 57344  }
   0xe   :  { %458 = vmatpush3.bf16.msra.mxu1 %v482_v7  ;;  %v217_v13 = vld [vmem:[%s683_s5 + $0x10] sm:$0xff]  ;;  %v218_v15 = vld [vmem:[%s683_s5 + $0x18] sm:$0xff]  ;;  %v220_v16 = vld [vmem:[%s683_s5 + $0x28] sm:$0xff]  ;;  %v92_v24 = vshrl.u32 %v91_v21, 7 }
   0xf   :  { %459 = vmatprep.subr.bf16.mxu1 %v514_v2  ;;  %277 = vperm.xlu1 %478, %v217_v13   ;;  %v222_v17 = vld [vmem:[%s683_s5 + $0x38] sm:$0xff]  ;;  %v224_v18 = vld [vmem:[%s683_s5 + $0x48] sm:$0xff]  ;;  %v85_v22 = vld [vmem:[%s680_s2] sm:$0x1] }
  0x10   :  { %v226_v19 = vld [vmem:[%s683_s5 + $0x58] sm:$0xff]  ;;  %v228_v20 = vld [vmem:[%s683_s5 + $0x68] sm:$0xff]  ;;  %v87_v23 = vpack.c.bf16 %v85_v22, %v85_v22  ;;  %v615_v26 = vsub.s32 0, %v92_v24  ;;  %v215_v36 = vld [vmem:[%s683_s5] sm:$0xff] }
  0x11   :  { %267 = vperm.xlu0 %477, %v215_v36   ;;  %v216_v37 = vld [vmem:[%s683_s5 + $0x8] sm:$0xff]  ;;  %v219_v38 = vld [vmem:[%s683_s5 + $0x20] sm:$0xff]  ;;  %v221_v39 = vld [vmem:[%s683_s5 + $0x30] sm:$0xff] }
  0x12   :  { %460 = vmatpush3.bf16.msra.mxu1 %v483_v8  ;;  %v89_v25 = vpack.i.b16 %v87_v23, %v87_v23  ;;  %v223_v40 = vld [vmem:[%s683_s5 + $0x40] sm:$0xff]  ;;  %v225_v41 = vld [vmem:[%s683_s5 + $0x50] sm:$0xff]  ;;  %v230_v44 = vld [vmem:[%s683_s5 + $0x78] sm:$0xff] }
  0x13   :  { %461 = vmatprep.subr.bf16.mxu1 %v514_v2  ;;  %282 = vperm.xlu1 %478, %v218_v15   ;;  %v227_v42 = vld [vmem:[%s683_s5 + $0x60] sm:$0xff]  ;;  %v229_v43 = vld [vmem:[%s683_s5 + $0x70] sm:$0xff] }
  0x14   :  { %v94_v27 = vrot.slane %v89_v25, %v615_v26  ;;  %v231_v45 = vld [vmem:[#allocation2] sm:$0x1] }
  0x15   :  { %272 = vperm.xlu0 %477, %v216_v37   ;;  %v114_v46 = vld [vmem:[%s682_s4] sm:$0x1]  ;;  %s517_s4 = smov [#allocation3]  }
  0x16   :  { %462 = vmatpush3.bf16.msra.mxu1 %v484_v9  ;;  %v204_v47 = vpack.c.bf16 %v114_v46, %v114_v46  ;;  %s418_s5 = sshll.u32 %s517_s4, 4  ;;  %s419_s5 = int_to_ptr.vmem [resolvable:$true] %s418_s5 }
  0x17   :  { %463 = vmatprep.subr.bf16.mxu1 %v514_v2  ;;  %292 = vperm.xlu1 %478, %v220_v16   ;;  %s490_s27 = scalar_lea.vmem %s419_s5, 16  ;;  %s494_s28 = scalar_lea.vmem %s419_s5, 32 }
  0x18   :  { %v206_v48 = vpack.i.b16 %v204_v47, %v204_v47  ;;  %p491_p0 = scmp.ne.s32.totalorder %s419_s5, %s490_s27  ;;  %p495_p1 = scmp.lt.s32.totalorder %s419_s5, %s419_s5 }
  0x19   :  { %287 = vperm.xlu0 %477, %v219_v38   ;;  %p496_p2 = scmp.lt.s32.totalorder %s494_s28, %s490_s27 }
  0x1a   :  { %464 = vmatpush3.bf16.msra.mxu1 %v485_v10  ;;  %v211_v49 = vrot.slane %v206_v48, %v615_v26 }
  0x1b   :  { %465 = vmatprep.subr.bf16.mxu1 %v514_v2  ;;  %302 = vperm.xlu1 %478, %v222_v17   ;;  %p497_p3 = por %p496_p2, %p495_p1 }
  0x1d   :  { %297 = vperm.xlu0 %477, %v221_v39   ;;  %p498_p4 = pnand %p497_p3, %p491_p0 }
  0x1e   :  { %466 = vmatpush3.bf16.msra.mxu1 %v486_v11 }
  0x1f   :  { %467 = vmatprep.subr.bf16.mxu1 %v514_v2  ;;  %312 = vperm.xlu1 %478, %v224_v18  }
  0x21   :  { %307 = vperm.xlu0 %477, %v223_v40  }
  0x22   :  { %468 = vmatpush3.bf16.msra.mxu1 %v487_v12 }
  0x23   :  { %322 = vperm.xlu1 %478, %v226_v19  }
  0x25   :  { %317 = vperm.xlu0 %477, %v225_v41  }
  0x27   :  { %332 = vperm.xlu1 %478, %v228_v20  }
  0x29   :  { %327 = vperm.xlu0 %477, %v227_v42  }
  0x2d   :  { %337 = vperm.xlu0 %477, %v229_v43  }
  0x31   :  { %342 = vperm.xlu0 %477, %v230_v44  }
  0x35   :  { %401 = vperm.xlu0 %477, %v231_v45  }
  0x8e   :  { %v278_v59 = vpop.permute.xlu1 %277 }
  0x90   :  { %v268_v5 = vpop.permute.xlu0 %267 }
  0x92   :  { %v283_v60 = vpop.permute.xlu1 %282 }
  0x94   :  { %v273_v8 = vpop.permute.xlu0 %272 }
  0x96   :  { %v293_v61 = vpop.permute.xlu1 %292 }
  0x98   :  { %v288_v10 = vpop.permute.xlu0 %287 }
  0x9a   :  { %v303_v62 = vpop.permute.xlu1 %302 }
  0x9c   :  { %v298_v14 = vpop.permute.xlu0 %297 }
  0x9e   :  { %v313_v63 = vpop.permute.xlu1 %312 }
  0xa0   :  { %v308_v24 = vpop.permute.xlu0 %307 }
  0xa2   :  { %v323_v0 = vpop.permute.xlu1 %322 }
  0xa4   :  { %v318_v36 = vpop.permute.xlu0 %317 }
  0xa6   :  { %v333_v1 = vpop.permute.xlu1 %332 }
  0xa8   :  { %v328_v47 = vpop.permute.xlu0 %327 }
  0xdb   :  { %v79_v28 = vpop.f32.mrb[0].mxu0 }
  0xdc   :  { %v86_v29 = vpack.c.bf16 %v79_v28, %v79_v28  ;;  %v451_v30 = vpop.f32.mrb[1].mxu0 }
  0xdd   :  { %v82_v31 = vpop.f32.mrb[2].mxu0 }
  0xde   :  { %v95_v32 = vadd.bf16 %v94_v27, %v86_v29  ;;  %v452_v33 = vpop.f32.mrb[3].mxu0 }
  0xe0   :  { %v96_v34 = vmul.bf16 1009007652, %v95_v32 }
  0xe2   :  { %v97_v35 = vmax.bf16 %v96_v34, %v95_v32 }
  0xe4   :  { %470 = vmatmul.mubr.bf16.vlgmr.msra.gmra.mrb[0].mxu1 %v97_v35 }
 0x1b7   :  { %v197_v50 = vpop.f32.mrb[0].mxu1 }
 0x1b8   :  { %v203_v51 = vpack.c.bf16 %v197_v50, %v197_v50  ;;  %v471_v52 = vpop.f32.mrb[1].mxu1 }
 0x1b9   :  { %v200_v53 = vpop.f32.mrb[2].mxu1 }
 0x1ba   :  { %v212_v54 = vadd.bf16 %v211_v49, %v203_v51  ;;  %v472_v55 = vpop.f32.mrb[3].mxu1 }
 0x1bc   :  { %v213_v56 = vmul.bf16 1009007652, %v212_v54 }
 0x1be   :  { %v214_v57 = vmax.bf16 %v213_v56, %v212_v54 }
 0x1c0   :  { %v232_v58 = vunpack.c.l.bf16 %v214_v57 }
 0x1c2   :  { %233 = vxpose.xlu1.b32.start.end [1/1] (short) %v232_v58, 128 }
 0x242   :  { %v249_v2 = vpop.trf.xlu1 }
 0x243   :  { %v345_v15 = vmul.f32 %v268_v5, %v249_v2 }
 0x245   :  { %v362_v20 = vsel %vm361_vm2, %v345_v15, 0.0 }
 0x246   :  { %v250_v3 = vpop.trf.xlu1 }
 0x247   :  { %v346_v13 = vmul.f32 %v273_v8, %v250_v3 }
 0x249   :  { %v363_v18 = vsel %vm361_vm2, %v346_v13, 0.0 }
 0x24a   :  { %v251_v4 = vpop.trf.xlu1  ;;  %v364_v23 = vadd.f32 %v363_v18, %v362_v20 }
 0x24b   :  { %v347_v16 = vmul.f32 %v278_v59, %v251_v4  ;;  %v338_v59 = vpop.permute.xlu0 %337 }
 0x24d   :  { %v365_v21 = vsel %vm361_vm2, %v347_v16, 0.0 }
 0x24e   :  { %v252_v6 = vpop.trf.xlu1  ;;  %v366_v29 = vadd.f32 %v365_v21, %v364_v23 }
 0x24f   :  { %v348_v19 = vmul.f32 %v283_v60, %v252_v6  ;;  %v343_v5 = vpop.permute.xlu0 %342 }
 0x251   :  { %v367_v27 = vsel %vm361_vm2, %v348_v19, 0.0 }
 0x252   :  { %v253_v7 = vpop.trf.xlu1  ;;  %v368_v32 = vadd.f32 %v367_v27, %v366_v29 }
 0x253   :  { %v349_v22 = vmul.f32 %v288_v10, %v253_v7  ;;  %v402_v15 = vpop.permute.xlu0 %401 }
 0x255   :  { %v369_v30 = vsel %vm361_vm2, %v349_v22, 0.0 }
 0x256   :  { %v254_v9 = vpop.trf.xlu1  ;;  %v370_v37 = vadd.f32 %v369_v30, %v368_v32 }
 0x257   :  { %v350_v28 = vmul.f32 %v293_v61, %v254_v9 }
 0x259   :  { %v371_v34 = vsel %vm361_vm2, %v350_v28, 0.0 }
 0x25a   :  { %v255_v11 = vpop.trf.xlu1  ;;  %v372_v40 = vadd.f32 %v371_v34, %v370_v37 }
 0x25b   :  { %v351_v31 = vmul.f32 %v298_v14, %v255_v11 }
 0x25d   :  { %v373_v38 = vsel %vm361_vm2, %v351_v31, 0.0 }
 0x25e   :  { %v256_v12 = vpop.trf.xlu1  ;;  %v374_v44 = vadd.f32 %v373_v38, %v372_v40 }
 0x25f   :  { %v352_v35 = vmul.f32 %v303_v62, %v256_v12 }
 0x261   :  { %v375_v42 = vsel %vm361_vm2, %v352_v35, 0.0 }
 0x262   :  { %v257_v17 = vpop.trf.xlu1  ;;  %v376_v48 = vadd.f32 %v375_v42, %v374_v44 }
 0x263   :  { %v353_v39 = vmul.f32 %v308_v24, %v257_v17  ;;  %v407_v17 = vrot.slane %v402_v15, %v615_v26 }
 0x265   :  { %v377_v45 = vsel %vm361_vm2, %v353_v39, 0.0 }
 0x266   :  { %v258_v25 = vpop.trf.xlu1  ;;  %v378_v52 = vadd.f32 %v377_v45, %v376_v48 }
 0x267   :  { %v354_v43 = vmul.f32 %v313_v63, %v258_v25 }
 0x269   :  { %v379_v50 = vsel %vm361_vm2, %v354_v43, 0.0 }
 0x26a   :  { %v259_v33 = vpop.trf.xlu1  ;;  %v380_v55 = vadd.f32 %v379_v50, %v378_v52 }
 0x26b   :  { %v355_v46 = vmul.f32 %v318_v36, %v259_v33 }
 0x26d   :  { %v381_v53 = vsel %vm361_vm2, %v355_v46, 0.0 }
 0x26e   :  { %v260_v41 = vpop.trf.xlu1  ;;  %v382_v60 = vadd.f32 %v381_v53, %v380_v55 }
 0x26f   :  { %v356_v51 = vmul.f32 %v323_v0, %v260_v41 }
 0x271   :  { %v383_v57 = vsel %vm361_vm2, %v356_v51, 0.0 }
 0x272   :  { %v261_v49 = vpop.trf.xlu1  ;;  %v384_v62 = vadd.f32 %v383_v57, %v382_v60 }
 0x273   :  { %v357_v54 = vmul.f32 %v328_v47, %v261_v49 }
 0x275   :  { %v385_v61 = vsel %vm361_vm2, %v357_v54, 0.0 }
 0x276   :  { %v262_v56 = vpop.trf.xlu1  ;;  %v386_v4 = vadd.f32 %v385_v61, %v384_v62 }
 0x277   :  { %v358_v58 = vmul.f32 %v333_v1, %v262_v56 }
 0x279   :  { %v387_v2 = vsel %vm361_vm2, %v358_v58, 0.0 }
 0x27a   :  { %v263_v63 = vpop.trf.xlu1  ;;  %v388_v6 = vadd.f32 %v387_v2, %v386_v4 }
 0x27b   :  { %v359_v3 = vmul.f32 %v338_v59, %v263_v63 }
 0x27d   :  { %v389_v0 = vsel %vm361_vm2, %v359_v3, 0.0 }
 0x27e   :  { %v264_v7 = vpop.trf.xlu1  ;;  %v390_v9 = vadd.f32 %v389_v0, %v388_v6 }
 0x27f   :  { %v360_v8 = vmul.f32 %v343_v5, %v264_v7 }
 0x281   :  { %v391_v10 = vsel %vm361_vm2, %v360_v8, 0.0 }
 0x282   :  { %v392_v1 = vadd.f32 %v391_v10, %v390_v9 }
 0x284   :  { %v393_v11 = vrot.slane %v392_v1, 4 }
 0x286   :  { %v394_v12 = vadd.f32 %v393_v11, %v392_v1 }
 0x288   :  { %v395_v13 = vrot.slane %v394_v12, 2 }
 0x28a   :  { %v396_v14 = vadd.f32 %v395_v13, %v394_v12 }
 0x28c   :  { %v397_v16 = vrot.slane %v396_v14, 1 }
 0x28e   :  { %v398_v18 = vadd.f32 %v397_v16, %v396_v14 }
 0x290   :  { %v408_v19 = vadd.f32 %v407_v17, %v398_v18 }
 0x292   :  { %488 = vtanh.f32 %v408_v19 }
 0x29c   :  { %v489_v20 = vpop.eup %488 }
 0x29d   :  { %411 = vst.msk [vmem:[#allocation3] sm:$0x1] %vm410_vm3, %v489_v20 }
 0x29e   :  { %501 = shalt.err (!%p498_p4)
}
 0x29f   :  { %s502_s8 = scalar_lea.hbm %s685_s7, 16 }
 0x2a0   :  { %p503_p5 = scmp.ne.s32.totalorder %s685_s7, %s502_s8  ;;  %p506_p6 = scmp.lt.u32.totalorder %s502_s8, %s685_s7 }
 0x2a2   :  { %p508_p7 = pnand %p506_p6, %p503_p5 }
 0x2a4   :  { %511 = shalt.err (!%p508_p7)
}
 0x2a5   :  { %421 = dma.vmem_to_hbm [thread:$0]  %s419_s5, 16, %s685_s7, [#allocation4]  }
 0x2a6   :  { %512 = dma.done.wait [#allocation4], 16  }
 0x2a7   :  { %513 = vsyncadd [#allocation4], 4294967280 }
 0x2a8   :  { %425 = vsyncpa [#allocation4], 1 }

</bundles_post_ra>
